<compile_context>
chip_gen: v7x
topology: tpu7x:2x2x1
jax: 0.10.0
libtpu: 0.0.40
codegen_flags: <defaults>
</compile_context>

<pallas_src>
import jax
import jax.numpy as jnp
from jax.experimental import pallas as pl
from jax.experimental.pallas import tpu as pltpu


def _round_up(x, m):
    return ((x + m - 1) // m) * m


# contract the last dim of both operands (A @ B^T), flash-attention style
_TRANS_B = (((1,), (1,)), ((), ()))

_MAX_TILE_ROWS = 2048  # ~4 MiB double-buffered f32 VMEM -> fits every gen's
                       # default scoped-VMEM budget (16 MiB on v5e).


# ----------------------------- Pallas kernel -------------------------------
def qfunc_kernel(s_ref, a_ref, hss_ref, hsa_ref, has_ref, haa_ref,
                 js_ref, ja_ref, c_ref, o_ref):
    # s_ref: (TB, ds), a_ref: (TB, da)        -- pipelined batch tiles
    # hss/hsa/has/haa = 0.5*{Pss,Psa,Pas,Paa} -- resident VMEM params
    # js: (1, ds), ja: (1, da) VMEM, c: (1,1) SMEM scalar
    # o_ref: (1, 1, TB) lane-dense output block
    f32 = jnp.float32
    s = s_ref[...]
    a = a_ref[...]

    # y_s = 0.5*(s@Pss + a@Pas) - Js          (TB, ds)
    ys = (jnp.dot(s, hss_ref[...], preferred_element_type=f32)
          + jnp.dot(a, has_ref[...], preferred_element_type=f32)
          - js_ref[...])
    # y_a = 0.5*(s@Psa + a@Paa) - Ja          (TB, da)
    ya = (jnp.dot(s, hsa_ref[...], preferred_element_type=f32)
          + jnp.dot(a, haa_ref[...], preferred_element_type=f32)
          - ja_ref[...])

    ms = s * ys                               # (TB, ds)
    ma = a * ya                               # (TB, da)

    # Row-sum via MXU ones-contraction: result is (1, TB) -> lane-major, so
    # the store below is a full-width unmasked vector store.
    ones_s = jnp.ones((1, ms.shape[-1]), f32)
    ones_a = jnp.ones((1, ma.shape[-1]), f32)
    q = (jax.lax.dot_general(ones_s, ms, _TRANS_B, preferred_element_type=f32)
         + jax.lax.dot_general(ones_a, ma, _TRANS_B, preferred_element_type=f32)
         + c_ref[0, 0])                       # (1, TB)
    o_ref[...] = q[None]                      # (1, 1, TB)


# ------------------------------- wrapper ------------------------------------
def init_params(key, d_state, d_act):
    """Deterministic synthetic params mirroring the torch __init__."""
    k1, k2, k3, k4, k5 = jax.random.split(key, 5)
    d_L = d_act * (d_act + 1) // 2
    return dict(
        Pss=jax.random.normal(k1, (d_state, d_state), jnp.float32),
        Psa=jax.random.normal(k2, (d_state, d_act), jnp.float32),
        Pas=jax.random.normal(k3, (d_act, d_state), jnp.float32),
        L=jnp.ones((d_L,), jnp.float32),       # torch.ones, not re-init'd
        Js=jax.random.normal(k4, (d_state,), jnp.float32),
        Ja=jax.random.normal(k5, (d_act,), jnp.float32),
        c=jnp.zeros((1, 1), jnp.float32),
    )


def prepare_params(params, d_act):
    """One-time host-side assembly, hoisted out of the per-call path:
    builds Paa = Lmat @ Lmat.T and folds the 0.5 quadratic factor into the
    parameter blocks so the kernel never multiplies by it."""
    rows, cols = jnp.tril_indices(d_act)
    Lmat = jnp.zeros((d_act, d_act), jnp.float32).at[rows, cols].set(params["L"])
    Paa = Lmat @ Lmat.T
    return dict(
        hss=0.5 * params["Pss"].astype(jnp.float32),
        hsa=0.5 * params["Psa"].astype(jnp.float32),
        has=0.5 * params["Pas"].astype(jnp.float32),
        haa=0.5 * Paa,
        js=params["Js"].reshape(1, -1).astype(jnp.float32),
        ja=params["Ja"].reshape(1, -1).astype(jnp.float32),
        c=params["c"].reshape(1, 1).astype(jnp.float32),
    )


@jax.jit
def qfunc_forward(states, actions, prepared):
    B, d_state = states.shape
    d_act = actions.shape[1]
    states = states.astype(jnp.float32)
    actions = actions.astype(jnp.float32)

    tb = min(_MAX_TILE_ROWS, _round_up(B, 8))
    bp = _round_up(B, tb)
    if bp != B:  # pad tail rows only (cheap; never pads the feature dim)
        states = jnp.zeros((bp, d_state), jnp.float32).at[:B].set(states)
        actions = jnp.zeros((bp, d_act), jnp.float32).at[:B].set(actions)
    num_tiles = bp // tb

    out = pl.pallas_call(
        qfunc_kernel,
        grid=(num_tiles,),
        out_shape=jax.ShapeDtypeStruct((num_tiles, 1, tb), jnp.float32),
        in_specs=[
            pl.BlockSpec((tb, d_state), lambda i: (i, 0)),      # states tile
            pl.BlockSpec((tb, d_act), lambda i: (i, 0)),        # actions tile
            pl.BlockSpec(memory_space=pltpu.MemorySpace.VMEM),  # hss
            pl.BlockSpec(memory_space=pltpu.MemorySpace.VMEM),  # hsa
            pl.BlockSpec(memory_space=pltpu.MemorySpace.VMEM),  # has
            pl.BlockSpec(memory_space=pltpu.MemorySpace.VMEM),  # haa
            pl.BlockSpec(memory_space=pltpu.MemorySpace.VMEM),  # js
            pl.BlockSpec(memory_space=pltpu.MemorySpace.VMEM),  # ja
            pl.BlockSpec(memory_space=pltpu.MemorySpace.SMEM),  # c scalar
        ],
        out_specs=pl.BlockSpec((1, 1, tb), lambda i: (i, 0, 0)),
        compiler_params=pltpu.CompilerParams(
            dimension_semantics=("parallel",)),
    )(states, actions, prepared["hss"], prepared["hsa"], prepared["has"],
      prepared["haa"], prepared["js"], prepared["ja"], prepared["c"])

    return out.reshape(-1)[:B].reshape(B, 1)  # (B, 1) Q estimates


def qfunc_reference(states, actions, params):
    """Pure-JAX reference mirroring the torch forward (elementwise math)."""
    d_act = actions.shape[1]
    rows, cols = jnp.tril_indices(d_act)
    Lmat = jnp.zeros((d_act, d_act), jnp.float32).at[rows, cols].set(params["L"])
    Paa = Lmat @ Lmat.T

    def bil(x, W, y):  # per-row x^T W y without MXU
        return jnp.sum(x[:, :, None] * W[None] * y[:, None, :], axis=(1, 2))

    quad = 0.5 * (bil(states, params["Pss"], states)
                  + bil(states, params["Psa"], actions)
                  + bil(actions, params["Pas"], states)
                  + bil(actions, Paa, actions))
    lin = -(states @ params["Js"]) - (actions @ params["Ja"])
    return (quad + lin)[:, None] + params["c"]


if __name__ == "__main__":
    d_state, d_act, batch = 4, 3, 2
    key = jax.random.PRNGKey(0)
    kp, ks, ka = jax.random.split(key, 3)

    params = init_params(kp, d_state, d_act)
    prepared = prepare_params(params, d_act)

    states = jax.random.normal(ks, (batch, d_state), jnp.float32)
    actions = jax.random.normal(ka, (batch, d_act), jnp.float32)

    out = jax.block_until_ready(qfunc_forward(states, actions, prepared))
    ref = qfunc_reference(states, actions, params)
    assert out.shape == (batch, 1)
    assert jnp.allclose(out, ref, atol=1e-3, rtol=1e-3)

    # Larger batch: exercises the multi-tile pipelined grid, tail padding and
    # the megacore-parallel batch axis.
    big_b = 4100
    kbs, kba = jax.random.split(jax.random.PRNGKey(1))
    states_b = jax.random.normal(kbs, (big_b, d_state), jnp.float32)
    actions_b = jax.random.normal(kba, (big_b, d_act), jnp.float32)
    out_b = jax.block_until_ready(qfunc_forward(states_b, actions_b, prepared))
    ref_b = qfunc_reference(states_b, actions_b, params)
    assert out_b.shape == (big_b, 1)
    assert jnp.allclose(out_b, ref_b, atol=1e-3, rtol=1e-3)

    print("KERNEL_OK")
</pallas_src>

<mosaic_0001>
module attributes {stable_mosaic.version = 11 : i64} {
  func.func @qfunc_kernel(%arg0: i32, %arg1: memref<8x4xf32, #tpu.memory_space<vmem>>, %arg2: memref<8x3xf32, #tpu.memory_space<vmem>>, %arg3: memref<4x4xf32, #tpu.memory_space<vmem>>, %arg4: memref<4x3xf32, #tpu.memory_space<vmem>>, %arg5: memref<3x4xf32, #tpu.memory_space<vmem>>, %arg6: memref<3x3xf32, #tpu.memory_space<vmem>>, %arg7: memref<1x4xf32, #tpu.memory_space<vmem>>, %arg8: memref<1x3xf32, #tpu.memory_space<vmem>>, %arg9: memref<1x1xf32, #tpu.memory_space<smem>>, %arg10: memref<1x1x8xf32, #tpu.memory_space<vmem>>) attributes {dimension_semantics = [#tpu.dimension_semantics<parallel>], iteration_bounds = array<i64: 1>, scalar_prefetch = 0 : i64, scratch_operands = 0 : i64, tpu.core_type = #tpu.core_type<tc>, window_params = [{transform_indices = @transform_0, window_bounds = array<i64: 8, 4>}, {transform_indices = @transform_1, window_bounds = array<i64: 8, 3>}, {pipeline_mode = #tpu.pipeline_mode<synchronous>, transform_indices = @transform_2, window_bounds = array<i64: 4, 4>}, {pipeline_mode = #tpu.pipeline_mode<synchronous>, transform_indices = @transform_3, window_bounds = array<i64: 4, 3>}, {pipeline_mode = #tpu.pipeline_mode<synchronous>, transform_indices = @transform_4, window_bounds = array<i64: 3, 4>}, {pipeline_mode = #tpu.pipeline_mode<synchronous>, transform_indices = @transform_5, window_bounds = array<i64: 3, 3>}, {pipeline_mode = #tpu.pipeline_mode<synchronous>, transform_indices = @transform_6, window_bounds = array<i64: 1, 4>}, {pipeline_mode = #tpu.pipeline_mode<synchronous>, transform_indices = @transform_7, window_bounds = array<i64: 1, 3>}, {transform_indices = @transform_8, window_bounds = array<i64: 1, 1>}, {transform_indices = @transform_9, window_bounds = array<i64: 1, 1, 8>}]} {
    %c0 = arith.constant 0 : index
    %c0_0 = arith.constant 0 : index
    %0 = vector.load %arg1[%c0, %c0_0] : memref<8x4xf32, #tpu.memory_space<vmem>>, vector<8x4xf32>
    %c0_1 = arith.constant 0 : index
    %c0_2 = arith.constant 0 : index
    %1 = vector.load %arg2[%c0_1, %c0_2] : memref<8x3xf32, #tpu.memory_space<vmem>>, vector<8x3xf32>
    %c0_3 = arith.constant 0 : index
    %c0_4 = arith.constant 0 : index
    %2 = vector.load %arg3[%c0_3, %c0_4] : memref<4x4xf32, #tpu.memory_space<vmem>>, vector<4x4xf32>
    %cst = arith.constant dense<0.000000e+00> : vector<8x4xf32>
    %3 = tpu.matmul %0, %2, %cst {dimension_numbers = #tpu.dot_dimension_numbers<[1], [0], [0], [1], [0, 0, 1, 1], [], []>} : vector<8x4xf32>, vector<4x4xf32>, vector<8x4xf32> -> vector<8x4xf32>
    %c0_5 = arith.constant 0 : index
    %c0_6 = arith.constant 0 : index
    %4 = vector.load %arg5[%c0_5, %c0_6] : memref<3x4xf32, #tpu.memory_space<vmem>>, vector<3x4xf32>
    %cst_7 = arith.constant dense<0.000000e+00> : vector<8x4xf32>
    %5 = tpu.matmul %1, %4, %cst_7 {dimension_numbers = #tpu.dot_dimension_numbers<[1], [0], [0], [1], [0, 0, 1, 1], [], []>} : vector<8x3xf32>, vector<3x4xf32>, vector<8x4xf32> -> vector<8x4xf32>
    %6 = arith.addf %3, %5 : vector<8x4xf32>
    %c0_8 = arith.constant 0 : index
    %c0_9 = arith.constant 0 : index
    %7 = vector.load %arg7[%c0_8, %c0_9] : memref<1x4xf32, #tpu.memory_space<vmem>>, vector<1x4xf32>
    %8 = vector.broadcast %7 : vector<1x4xf32> to vector<8x4xf32>
    %9 = arith.subf %6, %8 : vector<8x4xf32>
    %c0_10 = arith.constant 0 : index
    %c0_11 = arith.constant 0 : index
    %10 = vector.load %arg4[%c0_10, %c0_11] : memref<4x3xf32, #tpu.memory_space<vmem>>, vector<4x3xf32>
    %cst_12 = arith.constant dense<0.000000e+00> : vector<8x3xf32>
    %11 = tpu.matmul %0, %10, %cst_12 {dimension_numbers = #tpu.dot_dimension_numbers<[1], [0], [0], [1], [0, 0, 1, 1], [], []>} : vector<8x4xf32>, vector<4x3xf32>, vector<8x3xf32> -> vector<8x3xf32>
    %c0_13 = arith.constant 0 : index
    %c0_14 = arith.constant 0 : index
    %12 = vector.load %arg6[%c0_13, %c0_14] : memref<3x3xf32, #tpu.memory_space<vmem>>, vector<3x3xf32>
    %cst_15 = arith.constant dense<0.000000e+00> : vector<8x3xf32>
    %13 = tpu.matmul %1, %12, %cst_15 {dimension_numbers = #tpu.dot_dimension_numbers<[1], [0], [0], [1], [0, 0, 1, 1], [], []>} : vector<8x3xf32>, vector<3x3xf32>, vector<8x3xf32> -> vector<8x3xf32>
    %14 = arith.addf %11, %13 : vector<8x3xf32>
    %c0_16 = arith.constant 0 : index
    %c0_17 = arith.constant 0 : index
    %15 = vector.load %arg8[%c0_16, %c0_17] : memref<1x3xf32, #tpu.memory_space<vmem>>, vector<1x3xf32>
    %16 = vector.broadcast %15 : vector<1x3xf32> to vector<8x3xf32>
    %17 = arith.subf %14, %16 : vector<8x3xf32>
    %18 = arith.mulf %0, %9 : vector<8x4xf32>
    %19 = arith.mulf %1, %17 : vector<8x3xf32>
    %cst_18 = arith.constant 1.000000e+00 : f32
    %20 = vector.broadcast %cst_18 : f32 to vector<1x4xf32>
    %cst_19 = arith.constant 1.000000e+00 : f32
    %21 = vector.broadcast %cst_19 : f32 to vector<1x3xf32>
    %cst_20 = arith.constant dense<0.000000e+00> : vector<1x8xf32>
    %22 = tpu.matmul %20, %18, %cst_20 {dimension_numbers = #tpu.dot_dimension_numbers<[1], [1], [0], [0], [0, 0, 1, 0], [], []>} : vector<1x4xf32>, vector<8x4xf32>, vector<1x8xf32> -> vector<1x8xf32>
    %cst_21 = arith.constant dense<0.000000e+00> : vector<1x8xf32>
    %23 = tpu.matmul %21, %19, %cst_21 {dimension_numbers = #tpu.dot_dimension_numbers<[1], [1], [0], [0], [0, 0, 1, 0], [], []>} : vector<1x3xf32>, vector<8x3xf32>, vector<1x8xf32> -> vector<1x8xf32>
    %24 = arith.addf %22, %23 : vector<1x8xf32>
    %c0_22 = arith.constant 0 : index
    %c0_23 = arith.constant 0 : index
    %25 = memref.load %arg9[%c0_22, %c0_23] : memref<1x1xf32, #tpu.memory_space<smem>>
    %26 = vector.broadcast %25 : f32 to vector<1x8xf32>
    %27 = arith.addf %24, %26 : vector<1x8xf32>
    %28 = vector.shape_cast %27 : vector<1x8xf32> to vector<1x1x8xf32>
    %c0_24 = arith.constant 0 : index
    %c0_25 = arith.constant 0 : index
    %c0_26 = arith.constant 0 : index
    %29 = vector.load %arg10[%c0_24, %c0_25, %c0_26] : memref<1x1x8xf32, #tpu.memory_space<vmem>>, vector<1x1x8xf32>
    tpu.vector_store %arg10[%c0_24, %c0_25, %c0_26], %28 {strides = array<i32>} : memref<1x1x8xf32, #tpu.memory_space<vmem>>, vector<1x1x8xf32>,
    return
  }
  func.func @transform_0(%arg0: i32) -> (i32, i32) {
    %c0_i32 = arith.constant 0 : i32
    %c0_i32_0 = arith.constant 0 : i32
    return %arg0, %c0_i32 : i32, i32
  }
  func.func @transform_1(%arg0: i32) -> (i32, i32) {
    %c0_i32 = arith.constant 0 : i32
    %c0_i32_0 = arith.constant 0 : i32
    return %arg0, %c0_i32 : i32, i32
  }
  func.func @transform_2(%arg0: i32) -> (i32, i32) {
    %c0_i32 = arith.constant 0 : i32
    %c0_i32_0 = arith.constant 0 : i32
    %c0_i32_1 = arith.constant 0 : i32
    return %c0_i32, %c0_i32_0 : i32, i32
  }
  func.func @transform_3(%arg0: i32) -> (i32, i32) {
    %c0_i32 = arith.constant 0 : i32
    %c0_i32_0 = arith.constant 0 : i32
    %c0_i32_1 = arith.constant 0 : i32
    return %c0_i32, %c0_i32_0 : i32, i32
  }
  func.func @transform_4(%arg0: i32) -> (i32, i32) {
    %c0_i32 = arith.constant 0 : i32
    %c0_i32_0 = arith.constant 0 : i32
    %c0_i32_1 = arith.constant 0 : i32
    return %c0_i32, %c0_i32_0 : i32, i32
  }
  func.func @transform_5(%arg0: i32) -> (i32, i32) {
    %c0_i32 = arith.constant 0 : i32
    %c0_i32_0 = arith.constant 0 : i32
    %c0_i32_1 = arith.constant 0 : i32
    return %c0_i32, %c0_i32_0 : i32, i32
  }
  func.func @transform_6(%arg0: i32) -> (i32, i32) {
    %c0_i32 = arith.constant 0 : i32
    %c0_i32_0 = arith.constant 0 : i32
    %c0_i32_1 = arith.constant 0 : i32
    return %c0_i32, %c0_i32_0 : i32, i32
  }
  func.func @transform_7(%arg0: i32) -> (i32, i32) {
    %c0_i32 = arith.constant 0 : i32
    %c0_i32_0 = arith.constant 0 : i32
    %c0_i32_1 = arith.constant 0 : i32
    return %c0_i32, %c0_i32_0 : i32, i32
  }
  func.func @transform_8(%arg0: i32) -> (i32, i32) {
    %c0_i32 = arith.constant 0 : i32
    %c0_i32_0 = arith.constant 0 : i32
    %c0_i32_1 = arith.constant 0 : i32
    return %c0_i32, %c0_i32_0 : i32, i32
  }
  func.func @transform_9(%arg0: i32) -> (i32, i32, i32) {
    %c0_i32 = arith.constant 0 : i32
    %c0_i32_0 = arith.constant 0 : i32
    %c0_i32_1 = arith.constant 0 : i32
    return %arg0, %c0_i32, %c0_i32_0 : i32, i32, i32
  }
}

</mosaic_0001>

<bundles_post_ra>
// kernel: qfunc_forward.1
= control target key start
LH: loop header
LB: loop body
LE: loop exit
PB: predicated region body
PF: predicated region fallthrough
CT: control target
= control target key end

     0   :  { %vm41_vm0 = vcmask 1042432   ;;  %v582_v0 = vmov 0.0   ;;  %vm37_vm1 = vcmask 23552   ;;  %vm583_vm2 = vmmov 0   ;;  %s679_s4 = inlined_call_operand.vmem [shape: f32[3,4], index: 4, kind: input, shape index: {}]   ;;  %s680_s5 = inlined_call_operand.vmem [shape: f32[3,3], index: 5, kind: input, shape index: {}]   ;;  %s681_s1 = inlined_call_operand.vmem [shape: f32[8,3], index: 1, kind: input, shape index: {}]   ;;  %s682_s2 = inlined_call_operand.vmem [shape: f32[4,4], index: 2, kind: input, shape index: {}]   ;;  %s683_s3 = inlined_call_operand.vmem [shape: f32[4,3], index: 3, kind: input, shape index: {}]   ;;  %s684_s0 = inlined_call_operand.vmem [shape: f32[8,4], index: 0, kind: input, shape index: {}]   ;;  %s685_s6 = inlined_call_operand.vmem [shape: f32[1,4], index: 6, kind: input, shape index: {}]   ;;  %s686_s7 = inlined_call_operand.vmem [shape: f32[1,3], index: 7, kind: input, shape index: {}]   ;;  %s687_s8 = inlined_call_operand.<no memory space> [shape: f32[1,1], index: 8, kind: input, shape index: {}]   ;;  %s688_s9 = inlined_call_operand.vmem [shape: f32[1,1,8], index: 9, kind: output, shape index: {}]  }
   0x1   :  { %545 = vmatprep.subr.mxu0 %v582_v0  ;;  %555 = vmatprep.subr.mxu1 %v582_v0  ;;  %v36_v1 = vld [vmem:[%s679_s4] sm:$0x7]  ;;  %vm119_vm3 = vcmask 1043456   ;;  %vm115_vm4 = vcmask 31744   ;;  %v584_v17 = vmov 1.0   ;;  %v511_v20 = vstv %s687_s8 }
   0x2   :  { %v202_v2 = vld [vmem:[%s680_s5] sm:$0x7]  ;;  %546 = vmatpush3.msk.msra.mxu0 %vm41_vm0, %v36_v1  ;;  %547 = vmatprep.mubr.msk.f32.mxu0 %vm583_vm2, %v582_v0  ;;  %vm513_vm5 = vcmask 57344  }
   0x3   :  { %v34_v3 = vld [vmem:[%s681_s1] sm:$0xff]  ;;  %556 = vmatpush3.msk.msra.mxu1 %vm41_vm0, %v202_v2  ;;  %557 = vmatprep.mubr.msk.f32.mxu1 %vm583_vm2, %v582_v0 }
   0x4   :  { %v35_v4 = vld [vmem:[%s682_s2] sm:$0xf]  ;;  %548 = vmatmul.mubr.msk.f32.vlgmr.msra.gmra.mrb[0].mxu0 %vm37_vm1, %v34_v3  ;;  %550 = vmatprep.subr.mxu0 %v582_v0 }
   0x5   :  { %v201_v5 = vld [vmem:[%s683_s3] sm:$0xf]  ;;  %558 = vmatmul.mubr.msk.f32.vlgmr.msra.gmra.mrb[0].mxu1 %vm37_vm1, %v34_v3  ;;  %560 = vmatprep.subr.mxu1 %v582_v0 }
   0x6   :  { %551 = vmatpush3.msk.msra.mxu0 %vm119_vm3, %v35_v4  ;;  %561 = vmatpush3.msk.msra.mxu1 %vm119_vm3, %v201_v5  ;;  %v33_v6 = vld [vmem:[%s684_s0] sm:$0xff] }
   0x7   :  { %552 = vmatprep.mubr.msk.f32.mxu0 %vm583_vm2, %v582_v0  ;;  %562 = vmatprep.mubr.msk.f32.mxu1 %vm583_vm2, %v582_v0  ;;  %v523_v7 = vld [vmem:[%s685_s6] ss:$0 sm:$0xff] }
   0x8   :  { %565 = vmatprep.subr.mxu0 %v582_v0  ;;  %570 = vmatprep.subr.mxu1 %v582_v0  ;;  %v528_v8 = vld [vmem:[%s686_s7] ss:$0 sm:$0xff] }
   0xc   :  { %553 = vmatmul.mubr.msk.f32.vlgmr.msra.gmra.mrb[0].mxu0 %vm115_vm4, %v33_v6 }
   0xd   :  { %563 = vmatmul.mubr.msk.f32.vlgmr.msra.gmra.mrb[0].mxu1 %vm115_vm4, %v33_v6  ;;  %567 = vmatprep.mubr.msk.f32.mxu0 %vm583_vm2, %v582_v0 }
   0xe   :  { %572 = vmatprep.mubr.msk.f32.mxu1 %vm583_vm2, %v582_v0 }
  0xdf   :  { %v189_v9 = vpop.f32.mrb[0].mxu0 }
  0xe0   :  { %v200_v10 = vsub.f32 %v189_v9, %v523_v7  ;;  %v345_v11 = vpop.f32.mrb[0].mxu1  ;;  %v554_v12 = vpop.f32.mrb[1].mxu0 }
  0xe1   :  { %v356_v13 = vsub.f32 %v345_v11, %v528_v8  ;;  %v564_v14 = vpop.f32.mrb[1].mxu1 }
  0xe2   :  { %v357_v15 = vmul.f32 %v200_v10, %v33_v6 }
  0xe3   :  { %v358_v16 = vmul.f32 %v356_v13, %v34_v3 }
  0xe4   :  { %571 = vmatpush3.xpose.msk.msra.mxu1 %vm115_vm4, %v357_v15 }
  0xe5   :  { %566 = vmatpush3.xpose.msk.msra.mxu0 %vm37_vm1, %v358_v16 }
  0xe7   :  { %573 = vmatmul.mubr.msk.f32.vlgmr.msra.gmra.mrb[2].mxu1 %vm115_vm4, %v584_v17 }
  0xe8   :  { %568 = vmatmul.mubr.msk.f32.vlgmr.msra.gmra.mrb[2].mxu0 %vm37_vm1, %v584_v17 }
 0x1ba   :  { %v506_v18 = vpop.f32.mrb[2].mxu1 }
 0x1bb   :  { %v431_v19 = vpop.f32.mrb[2].mxu0  ;;  %v574_v21 = vpop.f32.mrb[3].mxu1 }
 0x1bc   :  { %v507_v22 = vadd.f32 %v506_v18, %v431_v19  ;;  %v569_v23 = vpop.f32.mrb[3].mxu0 }
 0x1be   :  { %v512_v24 = vadd.f32 %v511_v20, %v507_v22 }
 0x1c0   :  { %514 = vst.msk [vmem:[%s688_s9] sm:$0x1] %vm513_vm5, %v512_v24 }

</bundles_post_ra>
